<compile_context>
chip_gen: v6e
topology: v6e:2x2x1
jax: 0.10.0
libtpu: 0.0.40
codegen_flags: <defaults>
</compile_context>

<pallas_src>
import functools
import math

import jax
import jax.numpy as jnp
from jax.experimental import pallas as pl
from jax.experimental.pallas import tpu as pltpu


def _round_up(n, m):
    return ((n + m - 1) // m) * m


# ---------------------------------------------------------------------------
# Parameter fusion — do this ONCE when parameters are created, not per call.
# ---------------------------------------------------------------------------
def fuse_qkv_params(wq, bq, wk, bk, wv, bv, hidden_dim):
    """Returns (wqkv, bqkv, Hp) with each sub-block zero-padded to 128 lanes."""
    H = hidden_dim
    F = wq.shape[1]
    Hp = _round_up(H, 128)
    dtype = wq.dtype
    wqkv = jnp.zeros((F, 3 * Hp), dtype=dtype)
    wqkv = wqkv.at[:, 0 * Hp:0 * Hp + H].set(wq.T)
    wqkv = wqkv.at[:, 1 * Hp:1 * Hp + H].set(wk.T)
    wqkv = wqkv.at[:, 2 * Hp:2 * Hp + H].set(wv.T)
    bqkv = jnp.zeros((1, 3 * Hp), dtype=dtype)
    bqkv = bqkv.at[0, 0 * Hp:0 * Hp + H].set(bq)
    bqkv = bqkv.at[0, 1 * Hp:1 * Hp + H].set(bk)
    bqkv = bqkv.at[0, 2 * Hp:2 * Hp + H].set(bv)
    return wqkv, bqkv, Hp


# ---------------------------------------------------------------------------
# Kernel
# ---------------------------------------------------------------------------
def _sh_attention_kernel(x_ref, wqkv_ref, bqkv_ref, o_ref, *,
                         bt, seq, hidden_dim, h_pad):
    # x_ref: (bt*seq, F) -- rows for `bt` batch elements, flattened.
    x2d = x_ref[...]

    # Fused QKV projection: one MXU matmul with a lane-dense 3*Hp-wide output.
    qkv = jnp.dot(x2d, wqkv_ref[...],
                  preferred_element_type=jnp.float32) + bqkv_ref[...]   # (bt*seq, 3*Hp)
    qkv = qkv.reshape(bt, seq, 3 * h_pad)

    # 128-lane-aligned slices -> zero-cost vreg views (no XLU relayout work).
    q = qkv[:, :, 0 * h_pad:1 * h_pad]   # (bt, S, Hp); lanes >= H are exactly 0
    k = qkv[:, :, 1 * h_pad:2 * h_pad]
    v = qkv[:, :, 2 * h_pad:3 * h_pad]

    # Attention logits, contracting the padded hidden dim (zero lanes add 0).
    s = jnp.einsum('bqh,bkh->bqk', q, k,
                   preferred_element_type=jnp.float32)                  # (bt, S, S)

    # Softmax over last dim; the denominator and the module's post-softmax
    # 1/sqrt(H) are folded into ONE per-row scale applied AFTER e @ V:
    #   ((e/d)/sqrt(H)) @ V == (e @ V) * (1/(d*sqrt(H)))
    m = jnp.max(s, axis=-1, keepdims=True)
    e = jnp.exp(s - m)
    denom = jnp.sum(e, axis=-1, keepdims=True)                          # (bt, S, 1)

    z = jnp.einsum('bqk,bkh->bqh', e, v,
                   preferred_element_type=jnp.float32)                  # (bt, S, Hp)

    d = denom * math.sqrt(hidden_dim)
    inv = pl.reciprocal(d, approx=True)      # EUP vrcp, off the VPU critical path
    inv = inv * (2.0 - d * inv)              # one Newton step on a (bt,S,1) vec -> full f32 accuracy
    z = z * inv

    # V's weight is padded to Hp columns, so z is already lane-dense (bt*S, Hp):
    # store directly (unmasked full-width vst) -- no in-kernel pad/concatenate.
    o_ref[...] = z.reshape(bt * seq, h_pad).astype(o_ref.dtype)


# ---------------------------------------------------------------------------
# Block sizing / VMEM sizing
# ---------------------------------------------------------------------------
def _default_block_b(B, S):
    """Pick batch elements per grid step: prefer >= 2 grid steps (v7x dual-TC
    sharding + DMA/compute pipelining), then the largest bt with bt*S <= 256
    rows (fills the MXU M dim without blowing up VMEM), with (bt*S) % 8 == 0."""
    best = None
    for bt in range(1, B + 1):
        if B % bt:
            continue
        rows = bt * S
        if rows % 8 != 0 and rows != B * S:
            continue
        steps = B // bt
        key = (steps >= 2, rows <= 256, bt)
        if best is None or key > best[0]:
            best = (key, bt)
    return best[1] if best is not None else B


def _estimate_vmem_bytes(bt, S, F, Hp):
    f32 = 4
    x_blk = bt * S * F * f32
    out_blk = bt * S * Hp * f32
    w = F * 3 * Hp * f32
    b = 3 * Hp * f32
    inter = bt * S * (3 * Hp + 2 * S + 2 * Hp) * f32   # qkv, s/e, z (+slack)
    return 2 * (x_blk + out_blk + w + b) + 2 * inter


# ---------------------------------------------------------------------------
# Wrapper
# ---------------------------------------------------------------------------
def sh_attention(x, wqkv, bqkv, hidden_dim, *, block_b=None):
    """x: (B, S, 32) float32; wqkv/bqkv: outputs of fuse_qkv_params()."""
    B, S, F = x.shape
    H = hidden_dim
    Hp = wqkv.shape[1] // 3

    bt = _default_block_b(B, S) if block_b is None else block_b
    if B % bt != 0:
        raise ValueError(f"block_b={bt} must divide B={B}")
    rows = bt * S
    if rows % 8 != 0 and rows != B * S:
        raise ValueError(f"bt*S={rows} must be a multiple of 8 (or equal B*S)")

    x2d = x.reshape(B * S, F)

    kernel = functools.partial(_sh_attention_kernel, bt=bt, seq=S,
                               hidden_dim=H, h_pad=Hp)

    # Explicit scoped-VMEM limit (defaults are 16/32 MiB); clamp at 64 MiB so
    # the same sizing is safe on v7x's smaller physical VMEM.
    vmem_limit = int(min(max(_estimate_vmem_bytes(bt, S, F, Hp) + (1 << 20),
                             32 << 20), 64 << 20))

    out2d = pl.pallas_call(
        kernel,
        out_shape=jax.ShapeDtypeStruct((B * S, Hp), x.dtype),
        grid_spec=pltpu.PrefetchScalarGridSpec(
            num_scalar_prefetch=0,
            grid=(B // bt,),
            in_specs=[
                pl.BlockSpec((rows, F), lambda i: (i, 0)),       # x rows
                pl.BlockSpec((F, 3 * Hp), lambda i: (0, 0)),     # fused, padded W_qkv
                pl.BlockSpec((1, 3 * Hp), lambda i: (0, 0)),     # fused, padded b_qkv
            ],
            out_specs=pl.BlockSpec((rows, Hp), lambda i: (i, 0)),
        ),
        compiler_params=pltpu.CompilerParams(
            dimension_semantics=("parallel",),
            vmem_limit_bytes=vmem_limit),
    )(x2d, wqkv, bqkv)

    # NOTE(v5e): the padded Hp output is 4x the useful writeback bytes; on v5e
    # consider an unpadded (rows, H) out block or consuming the padded layout
    # directly.  On v6e/v7x the lane-dense store is the right trade.
    return out2d[:, :H].reshape(B, S, H)


def sh_attention_ref(x, wq, bq, wk, bk, wv, bv, hidden_dim):
    """Pure-JAX reference mirroring the PyTorch forward."""
    q = jnp.einsum("bsf,hf->bsh", x, wq) + bq
    k = jnp.einsum("bsf,hf->bsh", x, wk) + bk
    v = jnp.einsum("bsf,hf->bsh", x, wv) + bv
    s = jnp.einsum("bqh,bkh->bqk", q, k)
    p = jax.nn.softmax(s, axis=-1) / math.sqrt(hidden_dim)
    return jnp.einsum("bqk,bkh->bqh", p, v)


if __name__ == "__main__":
    hidden_dim = 32
    B, S, F = 2, 8, 32

    key = jax.random.PRNGKey(0)
    kx, kwq, kbq, kwk, kbk, kwv, kbv = jax.random.split(key, 7)

    # Deterministic synthetic parameters (nn.Linear(32, hidden_dim) shapes).
    bound = 1.0 / math.sqrt(F)
    x = jax.random.normal(kx, (B, S, F), dtype=jnp.float32)
    wq = jax.random.uniform(kwq, (hidden_dim, F), minval=-bound, maxval=bound, dtype=jnp.float32)
    bq = jax.random.uniform(kbq, (hidden_dim,), minval=-bound, maxval=bound, dtype=jnp.float32)
    wk = jax.random.uniform(kwk, (hidden_dim, F), minval=-bound, maxval=bound, dtype=jnp.float32)
    bk = jax.random.uniform(kbk, (hidden_dim,), minval=-bound, maxval=bound, dtype=jnp.float32)
    wv = jax.random.uniform(kwv, (hidden_dim, F), minval=-bound, maxval=bound, dtype=jnp.float32)
    bv = jax.random.uniform(kbv, (hidden_dim,), minval=-bound, maxval=bound, dtype=jnp.float32)

    # Fuse + pad weights ONCE (hoisted out of the per-call path).
    wqkv, bqkv, _ = fuse_qkv_params(wq, bq, wk, bk, wv, bv, hidden_dim)
    wqkv = jax.block_until_ready(wqkv)
    bqkv = jax.block_until_ready(bqkv)

    out = sh_attention(x, wqkv, bqkv, hidden_dim)
    out = jax.block_until_ready(out)

    ref = sh_attention_ref(x, wq, bq, wk, bk, wv, bv, hidden_dim)
    assert out.shape == (B, S, hidden_dim)
    assert jnp.allclose(out, ref, atol=1e-5, rtol=1e-5), "mismatch vs reference"

    print("KERNEL_OK")
</pallas_src>

<mosaic_0001>
module attributes {stable_mosaic.version = 11 : i64} {
  func.func @_sh_attention_kernel(%arg0: i32, %arg1: memref<8x32xf32, #tpu.memory_space<vmem>>, %arg2: memref<32x384xf32, #tpu.memory_space<vmem>>, %arg3: memref<1x384xf32, #tpu.memory_space<vmem>>, %arg4: memref<8x128xf32, #tpu.memory_space<vmem>>) attributes {dimension_semantics = [#tpu.dimension_semantics<parallel>], iteration_bounds = array<i64: 2>, scalar_prefetch = 0 : i64, scratch_operands = 0 : i64, tpu.core_type = #tpu.core_type<tc>, window_params = [{transform_indices = @transform_0, window_bounds = array<i64: 8, 32>}, {pipeline_mode = #tpu.pipeline_mode<synchronous>, transform_indices = @transform_1, window_bounds = array<i64: 32, 384>}, {pipeline_mode = #tpu.pipeline_mode<synchronous>, transform_indices = @transform_2, window_bounds = array<i64: 1, 384>}, {transform_indices = @transform_3, window_bounds = array<i64: 8, 128>}]} {
    %c0 = arith.constant 0 : index
    %c0_0 = arith.constant 0 : index
    %0 = vector.load %arg1[%c0, %c0_0] : memref<8x32xf32, #tpu.memory_space<vmem>>, vector<8x32xf32>
    %c0_1 = arith.constant 0 : index
    %c0_2 = arith.constant 0 : index
    %1 = vector.load %arg2[%c0_1, %c0_2] : memref<32x384xf32, #tpu.memory_space<vmem>>, vector<32x384xf32>
    %cst = arith.constant dense<0.000000e+00> : vector<8x384xf32>
    %2 = tpu.matmul %0, %1, %cst {dimension_numbers = #tpu.dot_dimension_numbers<[1], [0], [0], [1], [0, 0, 1, 1], [], []>} : vector<8x32xf32>, vector<32x384xf32>, vector<8x384xf32> -> vector<8x384xf32>
    %c0_3 = arith.constant 0 : index
    %c0_4 = arith.constant 0 : index
    %3 = vector.load %arg3[%c0_3, %c0_4] : memref<1x384xf32, #tpu.memory_space<vmem>>, vector<1x384xf32>
    %4 = vector.broadcast %3 : vector<1x384xf32> to vector<8x384xf32>
    %5 = arith.addf %2, %4 : vector<8x384xf32>
    %6 = vector.shape_cast %5 : vector<8x384xf32> to vector<1x8x384xf32>
    %7 = vector.extract_strided_slice %6 {offsets = [0, 0, 0], sizes = [1, 8, 128], strides = [1, 1, 1]} : vector<1x8x384xf32> to vector<1x8x128xf32>
    %8 = vector.extract_strided_slice %6 {offsets = [0, 0, 128], sizes = [1, 8, 128], strides = [1, 1, 1]} : vector<1x8x384xf32> to vector<1x8x128xf32>
    %9 = vector.extract_strided_slice %6 {offsets = [0, 0, 256], sizes = [1, 8, 128], strides = [1, 1, 1]} : vector<1x8x384xf32> to vector<1x8x128xf32>
    "tpu.trace_start"() <{level = 10 : i32, message = "bqh,bkh->bqk"}> : () -> ()
    %cst_5 = arith.constant dense<0.000000e+00> : vector<1x8x8xf32>
    %10 = tpu.matmul %7, %8, %cst_5 {dimension_numbers = #tpu.dot_dimension_numbers<[2], [2], [1], [1], [0, 0, 0, 1, 1, 1], [0], [0]>} : vector<1x8x128xf32>, vector<1x8x128xf32>, vector<1x8x8xf32> -> vector<1x8x8xf32>
    "tpu.trace_stop"() : () -> ()
    %cst_6 = arith.constant dense<0xFF800000> : vector<1x8xf32>
    %11 = vector.multi_reduction <maximumf>, %10, %cst_6 [2] : vector<1x8x8xf32> to vector<1x8xf32>
    %12 = vector.shape_cast %11 : vector<1x8xf32> to vector<1x8x1xf32>
    %13 = vector.broadcast %12 : vector<1x8x1xf32> to vector<1x8x8xf32>
    %14 = arith.subf %10, %13 : vector<1x8x8xf32>
    %15 = math.exp %14 : vector<1x8x8xf32>
    %cst_7 = arith.constant dense<0.000000e+00> : vector<1x8xf32>
    %16 = vector.multi_reduction <add>, %15, %cst_7 [2] : vector<1x8x8xf32> to vector<1x8xf32>
    %17 = vector.shape_cast %16 : vector<1x8xf32> to vector<1x8x1xf32>
    "tpu.trace_start"() <{level = 10 : i32, message = "bqk,bkh->bqh"}> : () -> ()
    %cst_8 = arith.constant dense<0.000000e+00> : vector<1x8x128xf32>
    %18 = tpu.matmul %15, %9, %cst_8 {dimension_numbers = #tpu.dot_dimension_numbers<[2], [1], [1], [2], [0, 0, 0, 1, 1, 2], [0], [0]>} : vector<1x8x8xf32>, vector<1x8x128xf32>, vector<1x8x128xf32> -> vector<1x8x128xf32>
    "tpu.trace_stop"() : () -> ()
    %cst_9 = arith.constant 5.65685415 : f32
    %19 = vector.broadcast %cst_9 : f32 to vector<1x8x1xf32>
    %20 = arith.mulf %17, %19 : vector<1x8x1xf32>
    %21 = tpu.reciprocal %20 {approx = true} : vector<1x8x1xf32> -> vector<1x8x1xf32>
    %22 = arith.mulf %20, %21 : vector<1x8x1xf32>
    %cst_10 = arith.constant 2.000000e+00 : f32
    %23 = vector.broadcast %cst_10 : f32 to vector<1x8x1xf32>
    %24 = arith.subf %23, %22 : vector<1x8x1xf32>
    %25 = arith.mulf %21, %24 : vector<1x8x1xf32>
    %26 = vector.broadcast %25 : vector<1x8x1xf32> to vector<1x8x128xf32>
    %27 = arith.mulf %18, %26 : vector<1x8x128xf32>
    %28 = vector.shape_cast %27 : vector<1x8x128xf32> to vector<8x128xf32>
    %c0_11 = arith.constant 0 : index
    %c0_12 = arith.constant 0 : index
    %29 = vector.load %arg4[%c0_11, %c0_12] : memref<8x128xf32, #tpu.memory_space<vmem>>, vector<8x128xf32>
    tpu.vector_store %arg4[%c0_11, %c0_12], %28 {strides = array<i32>} : memref<8x128xf32, #tpu.memory_space<vmem>>, vector<8x128xf32>,
    return
  }
  func.func @transform_0(%arg0: i32) -> (i32, i32) {
    %c0_i32 = arith.constant 0 : i32
    %c0_i32_0 = arith.constant 0 : i32
    return %arg0, %c0_i32 : i32, i32
  }
  func.func @transform_1(%arg0: i32) -> (i32, i32) {
    %c0_i32 = arith.constant 0 : i32
    %c0_i32_0 = arith.constant 0 : i32
    %c0_i32_1 = arith.constant 0 : i32
    return %c0_i32, %c0_i32_0 : i32, i32
  }
  func.func @transform_2(%arg0: i32) -> (i32, i32) {
    %c0_i32 = arith.constant 0 : i32
    %c0_i32_0 = arith.constant 0 : i32
    %c0_i32_1 = arith.constant 0 : i32
    return %c0_i32, %c0_i32_0 : i32, i32
  }
  func.func @transform_3(%arg0: i32) -> (i32, i32) {
    %c0_i32 = arith.constant 0 : i32
    %c0_i32_0 = arith.constant 0 : i32
    return %arg0, %c0_i32 : i32, i32
  }
}

</mosaic_0001>

<bundles_post_ra>
// kernel: tpu_custom_call.1
= control target key start
LH: loop header
LB: loop body
LE: loop exit
PB: predicated region body
PF: predicated region fallthrough
CT: control target
= control target key end

     0   :  { %8 = vsyncpa [#allocation3], 0  ;;  %s1068_s0 = inlined_call_operand.hbm [shape: f32[16,32], index: 0, kind: input, shape index: {}]   ;;  %s1069_s1 = inlined_call_operand.hbm [shape: f32[32,384], index: 1, kind: input, shape index: {}]   ;;  %s1070_s2 = inlined_call_operand.vmem [shape: f32[1,384], index: 2, kind: input, shape index: {}]   ;;  %s1071_s3 = inlined_call_operand.hbm [shape: f32[16,128], index: 3, kind: output, shape index: {}]  }
   0x1   :  { %10 = vsyncpa [#allocation3 + $0x1], 0 }
   0x2   :  { %11 = vsyncpa [#allocation6], 0 }
   0x3   :  { %12 = vsyncpa [#allocation4], 0 }
   0x4   :  { %14 = vsyncpa [#allocation4 + $0x1], 0  ;;  %s893_s12 = smov 0   ;;  %s895_s13 = smov 0  }
   0x5   :  { %s897_s14 = smov 0   ;;  %s899_s15 = smov 0  }
   0x6 LB: > { %s914_s16 = sadd.s32 4294967295, %s864_s15   ;;  %s630_s17 = sadd.s32 4294967294, %s864_s15   ;;  %s864_s15 = sphi %s899_s15, %s1093_s15   ;;  %s860_s14 = sphi %s897_s14, %s1092_s14   ;;  %s856_s13 = sphi %s895_s13, %s1091_s13   ;;  %s852_s12 = sphi %s893_s12, %s1090_s12  }
   0x7   : > { %p40_p0 = scmp.ne.s32.totalorder %s856_s13, %s852_s12  ;;  %p1072_p1 = scmp.eq.s32.totalorder %s914_s16, 0 }
   0x8   : > { %p112_p3 = scmp.eq.s32.totalorder %s630_s17, 1  ;;  %p631_p5 = scmp.ge.s32.totalorder %s864_s15, 1 }
   0x9   : > { %p923_p4 = por %p1072_p1, %p40_p0  ;;  %p119_p7 = scmp.lt.s32.totalorder %s864_s15, 3 }
   0xa   : > { %p928_p6 = por %p112_p3, %p40_p0  ;;  %s866_s21 = smov [#allocation5]  }
   0xb   : > { %s1076_s18 = scalar_select %p923_p4, 1, 0 }
   0xc   : > { %s1077_s19 = scalar_select %p928_p6, 1, 0 }
   0xd   : > { %p933_p8 = pnand %p631_p5, %p119_p7  ;;  %s131_s22 = sshll.u32 %s866_s21, 4  ;;  %s132_s22 = int_to_ptr.vmem [resolvable:$true] %s131_s22 }
   0xe   : > { %s947_s24 = sadd.s32 1, %s864_s15   ;;  %s27_s25 = sadd.s32 1, %s860_s14 }
   0xf   : > { %s1078_s20 = scalar_select %p933_p8, 1, 0 }
  0x10   : > { %p685_p9 = pneg %p933_p8  ;;  %s24_s26 = ssub.s32 %s864_s15, %s947_s24 }
  0x11   : > { %s753_s27 = scalar_lea.vmem %s132_s22, 1536  ;;  %p761_p5 = scmp.lt.s32.totalorder %s132_s22, %s132_s22 }
  0x12   : > { %p942_p11 = pnand %p685_p9, %p1072_p1  ;;  %p754_p13 = scmp.ne.s32.totalorder %s132_s22, %s753_s27 }
  0x13   : > { %p762_p7 = scmp.lt.s32.totalorder %s753_s27, %s753_s27 }
  0x14   : > { %p744_p12 = pneg %p942_p11 }
  0x15   : > { %p763_p10 = por %p762_p7, %p761_p5 }
  0x16   : > { %p756_p0 = pnand %p754_p13, %p744_p12 }
  0x18   : > { %p757_p3 = pneg %p756_p0 }
  0x1a   : > { %p764_p2 = pnand %p763_p10, %p757_p3 }
  0x1c   : > { %767 = shalt.err (!%p764_p2)
}
  0x1d   : > { %s867_s28 = smov 384   ;;  %s868_s29 = smov 24  }
  0x1e   : > { %688 = dma.hbm_to_vmem [thread:$0]  (!%p942_p11), %s1069_s1, 1536, %s132_s22, [#allocation6], %s867_s28, %s867_s28, %s868_s29  }
  0x1f   : > { %p25_p9 = scmp.eq.s32.totalorder %s24_s26, 0  ;;  %p34_p12 = scmp.ne.s32.totalorder %s860_s14, %s856_s13 }
  0x20   : > { %p35_p10 = scmp.eq.s32.totalorder %s864_s15, 0  ;;  %p698_p2 = scmp.lt.s32.totalorder %s864_s15, 2 }
  0x21   : > { %s964_s5 = scalar_select %p25_p9, %s860_s14, %s27_s25  }
  0x22   : > { %p36_p13 = por %p35_p10, %p34_p12  ;;  %p1080_p0 = scmp.eq.s32.totalorder %s914_s16, 1 }
  0x23   : > { %s148_s7 = sand.u32 1, %s860_s14   ;;  %s635_s8 = sshll.u32 %s864_s15, 7 }
  0x24   : > { %p968_p3 = por %p1080_p0, %p34_p12  ;;  %s634_s9 = sshll.u32 %s148_s7, 3 }
  0x25   : > { %s977_s17 = scalar_lea.hbm %s1068_s0, %s635_s8  ;;  %s152_s21 = scalar_lea.vmem [#allocation2], %s634_s9 }
  0x26   : > { %s1081_s6 = scalar_select %p968_p3, 1, 0 }
  0x27   : > { %s159_s22 = sshll.u32 %s152_s21, 4  ;;  %p979_p11 = pnand %p698_p2, %p36_p13  ;;  %s160_s22 = int_to_ptr.vmem [resolvable:$true] %s159_s22 }
  0x28   : > { %s149_s25 = scalar_lea.sflag [#allocation3], %s148_s7  ;;  %s768_s26 = scalar_lea.hbm %s977_s17, 128 }
  0x29   : > { %p769_p5 = scmp.ne.s32.totalorder %s977_s17, %s768_s26  ;;  %p770_p7 = pneg %p979_p11 }
  0x2a   : > { %s773_s29 = scalar_lea.hbm %s1068_s0, 256  ;;  %p774_p10 = scmp.lt.s32.totalorder %s977_s17, %s1068_s0 }
  0x2b   : > { %p771_p9 = pnand %p770_p7, %p769_p5  ;;  %p775_p2 = scmp.lt.s32.totalorder %s773_s29, %s768_s26 }
  0x2d   : > { %p772_p12 = pneg %p771_p9  ;;  %p776_p13 = por %p775_p2, %p774_p10 }
  0x2f   : > { %p777_p0 = pnand %p776_p13, %p772_p12 }
  0x31   : > { %780 = shalt.err (!%p777_p0)
}
  0x32   : > { %s781_s8 = scalar_lea.vmem %s160_s22, 128  ;;  %s869_s7 = smov [#allocation2]  }
  0x33   : > { %p782_p1 = scmp.ne.s32.totalorder %s160_s22, %s781_s8  ;;  %s786_s9 = sshll.u32 %s869_s7, 4  ;;  %s787_s9 = int_to_ptr.vmem [resolvable:$false] %s786_s9 }
  0x34   : > { %s788_s10 = scalar_lea.vmem %s787_s9, 256  ;;  %p789_p5 = scmp.lt.s32.totalorder %s160_s22, %s787_s9 }
  0x35   : > { %p784_p6 = pnand %p782_p1, %p770_p7  ;;  %p790_p9 = scmp.lt.s32.totalorder %s788_s10, %s781_s8 }
  0x37   : > { %p785_p3 = pneg %p784_p6  ;;  %p791_p4 = por %p790_p9, %p789_p5 }
  0x39   : > { %p792_p8 = pnand %p791_p4, %p785_p3 }
  0x3b   : > { %795 = shalt.err (!%p792_p8)
}
  0x3c   : > { %692 = dma.hbm_to_vmem [thread:$0]  (!%p979_p11), %s977_s17, 128, %s160_s22, %s149_s25  }
  0x3d   : > { %p1083_p12 = scmp.ne.s32.totalorder %s1078_s20, 0 }
  0x3e   : > { %s1000_s11 = sand.u32 (!%p1083_p12), 1, %s856_s13   ;;  %p1084_p1 = scmp.ne.s32.totalorder (!%p1083_p12), %s1076_s18, 0 }
  0x3f   : > { %168 = sbr.rel (%p1083_p12) target bundleno = 840 (0x348), region = 32  ;;  %s637_s21 = sshll.u32 (!%p1083_p12), %s1000_s11, 3 }
  0x40   : > { %s171_s26 = scalar_lea.sflag (!%p1083_p12), [#allocation3], %s1000_s11  ;;  %s174_s27 = scalar_lea.vmem (!%p1083_p12), [#allocation2], %s637_s21 }
  0x44   : > { %839 = dma.done.wait (%p1084_p1), %s171_s26, 128  }
  0x45   : > { %841 = vsyncadd (%p1084_p1), %s171_s26, 4294967168  ;;  %p1085_p4 = scmp.eq.s32.totalorder %s914_s16, 0 }
  0x47   : > { %843 = dma.done.wait (%p1085_p4), [#allocation6], 1536   ;;  %p1086_p6 = pmov %p1085_p4 }
  0x48   : > { %v870_v0 = vmov 0.0   ;;  %v212_v1 = vld [vmem:[#allocation5 + $0x50] sm:$0xff]  ;;  %v211_v2 = vld [vmem:[#allocation5 + $0x48] sm:$0xff]  ;;  %v209_v3 = vld [vmem:[#allocation5 + $0x38] sm:$0xff]  ;;  %vm231_vm0 = vcmask 261120   ;;  %vm871_vm1 = vmmov 0   ;;  %v216_v14 = vlaneseq }
  0x49   : > { %845 = vsyncadd (%p1086_p6), [#allocation6], 4294965760  ;;  %299 = vmatprep.mubr.f32.mxu0 %v870_v0  ;;  %656 = vmatprep.subr.mxu1 %v870_v0  ;;  %v208_v4 = vld [vmem:[#allocation5 + $0x30] sm:$0xff]  ;;  %v206_v5 = vld [vmem:[#allocation5 + $0x20] sm:$0xff]  ;;  %vm446_vm2 = vcmask 64512   ;;  %s644_s17 = sshll.u32 %s914_s16, 7 }
  0x4a   : > { %259 = vmatprep.subr.mxu0 %v212_v1  ;;  %v205_v6 = vld [vmem:[#allocation5 + $0x18] sm:$0xff]  ;;  %v203_v7 = vld [vmem:[#allocation5 + $0x8] sm:$0xff]  ;;  %v202_v8 = vld [vmem:[#allocation5] sm:$0xff]  ;;  %664 = vmatprep.mubr.msk.f32.mxu1 %vm871_vm1, %v870_v0  ;;  %v217_v15 = vshrl.u32 %v216_v14, 7  ;;  %s200_s22 = scalar_lea.vmem [#allocation7], %s637_s21  ;;  %s1031_s29 = scalar_lea.hbm %s1071_s3, %s644_s17 }
  0x4b   : > { %260 = vmatpush1.msra.mxu0 %v211_v2  ;;  %v201_v9 = vld [vmem:[%s174_s27] sm:$0xff]  ;;  %v210_v11 = vld [vmem:[#allocation5 + $0x40] sm:$0xff]  ;;  %v207_v12 = vld [vmem:[#allocation5 + $0x28] sm:$0xff]  ;;  %s550_s23 = sshll.u32 %s200_s22, 4  ;;  %s537_s30 = scalar_lea.sflag [#allocation4], %s1000_s11  ;;  %s551_s23 = int_to_ptr.vmem [resolvable:$true] %s550_s23 }
  0x4c   : > { %261 = vmatprep.subr.mxu0 %v209_v3  ;;  %v213_v10 = vld [vmem:[#allocation5 + $0x58] sm:$0xff]  ;;  %v204_v13 = vld [vmem:[#allocation5 + $0x10] sm:$0xff]  ;;  %v222_v16 = vsub.s32 1, %v217_v15  ;;  %v218_v18 = vsub.s32 0, %v217_v15  ;;  %v226_v28 = vsub.s32 2, %v217_v15  ;;  %s796_s4 = scalar_lea.vmem %s551_s23, 128 }
  0x4d   : > { %262 = vmatpush1.msra.mxu0 %v208_v4  ;;  %657 = vmatpush3.msra.mxu1 %v213_v10  ;;  %v214_v17 = vld [vmem:[%s1070_s2] sm:$0x7]  ;;  %p797_p8 = scmp.ne.s32.totalorder %s551_s23, %s796_s4  ;;  %p1087_p3 = scmp.ne.s32.totalorder %s1081_s6, 0 }
  0x4e   : > { %263 = vmatprep.subr.mxu0 %v206_v5  ;;  %658 = vmatprep.subr.mxu1 %v870_v0  ;;  %v223_v19 = vrot.slane %v214_v17, %v222_v16  ;;  %v219_v21 = vrot.slane %v214_v17, %v218_v18  ;;  %v227_v30 = vrot.slane %v214_v17, %v226_v28  ;;  %s872_s16 = smov [#allocation7]  }
  0x4f   : > { %264 = vmatpush1.msra.mxu0 %v205_v6  ;;  %659 = vmatpush3.msra.mxu1 %v210_v11  ;;  %p798_p11 = pnand %p797_p8, %p1087_p3  ;;  %s800_s8 = sshll.u32 %s872_s16, 4  ;;  %s801_s8 = int_to_ptr.vmem [resolvable:$false] %s800_s8 }
  0x50   : > { %265 = vmatprep.subr.mxu0 %v203_v7  ;;  %660 = vmatprep.subr.mxu1 %v870_v0  ;;  %s802_s7 = scalar_lea.vmem %s801_s8, 256  ;;  %p803_p10 = scmp.lt.s32.totalorder %s551_s23, %s801_s8 }
  0x51   : > { %266 = vmatpush1.msra.mxu0 %v202_v8  ;;  %661 = vmatpush3.msra.mxu1 %v207_v12  ;;  %p799_p7 = pneg %p798_p11  ;;  %p804_p2 = scmp.lt.s32.totalorder %s802_s7, %s796_s4 }
  0x52   : > { %640 = vmatmul.mubr.msk.f32.vlgmr.msra.gmra.mxu0 %vm231_vm0, %v201_v9  ;;  %667 = vmatprep.subr.mxu0 %v870_v0 }
  0x53   : > { %669 = vmatprep.mubr.msk.f32.mxu0 %vm871_vm1, %v870_v0  ;;  %662 = vmatprep.subr.mxu1 %v870_v0  ;;  %p805_p13 = por %p804_p2, %p803_p10 }
  0x54   : > { %663 = vmatpush3.msra.mxu1 %v204_v13 }
  0x55   : > { %665 = vmatmul.mubr.msk.f32.vlgmr.msra.gmra.mxu1 %vm231_vm0, %v201_v9  ;;  %672 = vmatprep.subr.mxu1 %v870_v0  ;;  %p806_p0 = pnand %p805_p13, %p799_p7 }
  0x56   : > { %674 = vmatprep.mubr.msk.f32.mxu1 %vm871_vm1, %v870_v0 }
 0x112   : > { %v301_v20 = vpop.f32.mrf.mxu0 }
 0x113   : > { %v302_v24 = vadd.f32 %v301_v20, %v219_v21 }
 0x114   : > { %v303_v22 = vpop.f32.mrf.mxu0 }
 0x115   : > { %v304_v23 = vadd.f32 %v303_v22, %v223_v19  ;;  %v372_v29 = vpop.f32.mrf.mxu1 }
 0x116   : > { %v373_v32 = vadd.f32 %v372_v29, %v227_v30 }
 0x117   : > { %668 = vmatpush3.xpose.msra.mxu0 %v304_v23  ;;  %v666_v31 = vpop.f32.mrf.mxu1 }
 0x118   : > { %673 = vmatpush3.msra.mxu1 %v373_v32 }
 0x11a   : > { %670 = vmatmul.mubr.f32.vlgmr.msra.gmra.mxu0 %v302_v24 }
 0x1da   : > { %v442_v25 = vpop.f32.mrf.mxu0 }
 0x1db   : > { %v447_v26 = vsel %vm446_vm2, %v442_v25, -inf }
 0x1dc   : > { %448 = vmax.xlane.f32.xlu0 %v447_v26  ;;  %v671_v27 = vpop.f32.mrf.mxu0 }
 0x265   : > { %v449_v33 = vpop.xlane.xlu0 %448 }
 0x266   : > { %v450_v34 = vsub.f32 %v442_v25, %v449_v33 }
 0x268   : > { %v451_v35 = vmul.f32 1.442695, %v450_v34 }
 0x26a   : > { %738 = vpow2.f32 %v451_v35 }
 0x277   : > { %v739_v36 = vpop.eup %738 }
 0x278   : > { %675 = vmatmul.mubr.msk.f32.vlgmr.msra.gmra.mxu1 %vm446_vm2, %v739_v36  ;;  %v453_v37 = vsel %vm446_vm2, %v739_v36, 0.0 }
 0x279   : > { %454 = vadd.xlane.f32.xlu0 %v453_v37 }
 0x302   : > { %v455_v38 = vpop.xlane.xlu0 %454 }
 0x303   : > { %v529_v39 = vmul.f32 5.656854, %v455_v38 }
 0x305   : > { %740 = vrcp.f32 %v529_v39 }
 0x312   : > { %v741_v40 = vpop.eup %740 }
 0x313   : > { %v531_v41 = vmul.f32 %v741_v40, %v529_v39 }
 0x315   : > { %v532_v42 = vsub.f32 2.0, %v531_v41 }
 0x317   : > { %v533_v43 = vmul.f32 %v741_v40, %v532_v42 }
 0x338   : > { %v525_v44 = vpop.f32.mrf.mxu1 }
 0x339   : > { %v534_v45 = vmul.f32 %v533_v43, %v525_v44 }
 0x33a   : > { %v676_v46 = vpop.f32.mrf.mxu1 }
 0x33b   : > { %535 = vst [vmem:[%s200_s22] sm:$0xff] %v534_v45 }
 0x33c   : > { %809 = shalt.err (!%p806_p0)
}
 0x33d   : > { %s810_s9 = scalar_lea.hbm %s1031_s29, 128  ;;  %s814_s21 = scalar_lea.hbm %s1071_s3, 256 }
 0x33e   : > { %p811_p5 = scmp.ne.s32.totalorder %s1031_s29, %s810_s9  ;;  %p815_p1 = scmp.lt.s32.totalorder %s1031_s29, %s1071_s3 }
 0x33f   : > { %p816_p4 = scmp.lt.s32.totalorder %s814_s21, %s810_s9 }
 0x340   : > { %p812_p9 = pnand %p811_p5, %p1087_p3 }
 0x341   : > { %p817_p6 = por %p816_p4, %p815_p1 }
 0x342   : > { %p813_p12 = pneg %p812_p9 }
 0x344   : > { %p818_p8 = pnand %p817_p6, %p813_p12 }
 0x346   : > { %821 = shalt.err (!%p818_p8)
}
 0x347   : > { %683 = dma.vmem_to_hbm [thread:$0]  (%p1087_p3), %s551_s23, 128, %s1031_s29, %s537_s30  }
 0x348 PF: > { %s562_s18 = sand.u32 1, %s852_s12   ;;  %p1088_p11 = scmp.ne.s32.totalorder %s1077_s19, 0 }
 0x349   : > { %p1089_p7 = scmp.ge.s32.totalorder %s864_s15, 2  ;;  %s563_s20 = scalar_lea.sflag [#allocation4], %s562_s18 }
 0x34b   : > { %p694_p10 = pnand %p1089_p7, %p1088_p11 }
 0x34d   : > { %p695_p2 = pneg %p694_p10 }
 0x34f   : > { %847 = dma.done.wait (%p695_p2), %s563_s20, 128  }
 0x350   : > { %849 = vsyncadd (%p695_p2), %s563_s20, 4294967168  ;;  %p17_p13 = scmp.ge.s32.totalorder %s947_s24, 4   ;;  %s1090_s12 = smov %s856_s13 }
 0x351   : > { %s1091_s13 = smov %s860_s14  ;;  %s1092_s14 = smov %s964_s5 }
 0x352   : > { %s1093_s15 = smov %s947_s24  ;;  %19 = sbr.rel (!%p17_p13) target bundleno = 6 (0x6), region = 81 }
 0x357   :  { %568 = vsyncpa [#allocation3], 1 }
 0x358   :  { %570 = vsyncpa [#allocation3 + $0x1], 1 }
 0x359   :  { %571 = vsyncpa [#allocation6], 1 }
 0x35a   :  { %572 = vsyncpa [#allocation4], 1 }
 0x35b   :  { %574 = vsyncpa [#allocation4 + $0x1], 1 }

</bundles_post_ra>
